<compile_context>
chip_gen: v7x
topology: tpu7x:2x2x1
jax: 0.10.0
libtpu: 0.0.40
codegen_flags: <defaults>
</compile_context>

<pallas_src>
import functools

import jax
import jax.numpy as jnp
from jax.experimental import pallas as pl
from jax.experimental.pallas import tpu as pltpu

K = 3  # conv kernel size (padding=1, stride=1, bias=False)


# --------------------------------------------------------------------------- #
# Kernel
# --------------------------------------------------------------------------- #
def _sa_kernel(w_ref, m_ref, x_ref, o_ref, *scratch, W, n_cchunks):
    """One grid step.

    w_ref : SMEM (18,) f32 conv weights, layout [in_c, kh, kw]; the 1/C of the
            channel mean is already folded into the in_c==0 (avg) taps.
    m_ref : VMEM (4, HW) f32 edge masks [left_ok, right_ok, top_ok, bot_ok]
            for the flattened H*W layout (reproduce the conv zero padding).
    x_ref : VMEM (nb, cc, HW) input C-chunk (lane-dense last dim).
    o_ref : VMEM (nb, HW) (or (nb, 1, HW) fallback) output block.
    scratch (only when n_cchunks > 1): running channel sum / max, (nb, HW) f32.
    """
    nb, cc, HW = x_ref.shape

    # ---- dense 8-sublane partial channel reduction over this C-chunk --------
    CH = min(8, cc)
    nfull = cc // CH
    blk = x_ref[:, 0:CH, :].astype(jnp.float32)             # (nb, CH, HW)
    sum_g = blk
    max_g = blk
    for g in range(1, nfull):                                # static, unrolled
        blk = x_ref[:, g * CH:(g + 1) * CH, :].astype(jnp.float32)
        sum_g = sum_g + blk                                  # full-vreg VPU
        max_g = jnp.maximum(max_g, blk)
    chunk_sum = jnp.sum(sum_g, axis=1)                       # (nb, HW)  XLU
    chunk_max = jnp.max(max_g, axis=1)
    rem = cc - nfull * CH
    if rem:
        tail = x_ref[:, nfull * CH:cc, :].astype(jnp.float32)
        chunk_sum = chunk_sum + jnp.sum(tail, axis=1)
        chunk_max = jnp.maximum(chunk_max, jnp.max(tail, axis=1))

    def _roll(v, s):
        s = s % HW
        return v if s == 0 else pltpu.roll(v, shift=s, axis=1)

    def _finalize(sum_plane, max_plane):
        # 3x3 conv, factored horizontal -> vertical.  Horizontal: 2 lane rolls
        # + left/right masks per channel; the 2 channels are merged into three
        # dy-rows; vertical: 2 row rolls (+/-W) + top/bot masks total.
        lm = m_ref[0:1, :]
        rm = m_ref[1:2, :]
        tm = m_ref[2:3, :]
        bm = m_ref[3:4, :]
        maps = (sum_plane, max_plane)      # 1/C already folded into avg weights
        vrow = [None, None, None]
        for c in range(2):
            b0 = maps[c]
            bl = _roll(b0, 1) * lm                       # tap at x-1
            br = _roll(b0, HW - 1) * rm                  # tap at x+1
            for r in range(K):                           # kh = r, dy = r - 1
                w_m1 = w_ref[c * 9 + r * 3 + 0]
                w_0 = w_ref[c * 9 + r * 3 + 1]
                w_p1 = w_ref[c * 9 + r * 3 + 2]
                t = w_m1 * bl + w_0 * b0 + w_p1 * br
                vrow[r] = t if vrow[r] is None else vrow[r] + t
        acc = vrow[1]
        acc = acc + _roll(vrow[0], W) * tm               # row y-1
        acc = acc + _roll(vrow[2], HW - W) * bm          # row y+1
        # exact sigmoid (the EUP-approximate reciprocal was outside tolerance)
        res = 1.0 / (1.0 + jnp.exp(-acc))
        if o_ref.ndim == 3:                              # (nb, 1, HW) fallback
            o_ref[...] = res[:, None, :].astype(o_ref.dtype)
        else:                                            # dense 2-D store
            o_ref[...] = res.astype(o_ref.dtype)

    if n_cchunks == 1:
        _finalize(chunk_sum, chunk_max)
    else:
        sum_ref, max_ref = scratch
        k = pl.program_id(1)

        @pl.when(k == 0)
        def _():
            sum_ref[...] = jnp.zeros_like(sum_ref)
            max_ref[...] = jnp.full_like(max_ref, -jnp.inf)

        sum_ref[...] = sum_ref[...] + chunk_sum
        max_ref[...] = jnp.maximum(max_ref[...], chunk_max)

        @pl.when(k == n_cchunks - 1)
        def _():
            _finalize(sum_ref[...], max_ref[...])


# --------------------------------------------------------------------------- #
# Tiling heuristics (generation aware)
# --------------------------------------------------------------------------- #
def _vmem_capacity_bytes():
    try:
        cap = int(getattr(pltpu.get_tpu_info(), "vmem_capacity_bytes", 0) or 0)
        if cap > 0:
            return cap
    except Exception:
        pass
    return 128 * 1024 * 1024          # v5e / v6e default


def _divisors(n):
    return [d for d in range(1, n + 1) if n % d == 0]


def _choose_tiling(N, C, HW, in_itemsize, out_itemsize):
    """Returns (nb, cc, n_cchunks, dense_out, vmem_limit_bytes)."""
    MiB = 1024 * 1024
    phys = _vmem_capacity_bytes()
    small_vmem = phys <= 64 * MiB                  # v7x-like: 64 MiB / TC
    vmem_budget = (48 if small_vmem else 64) * MiB
    in_cap = (6 if small_vmem else 12) * MiB       # per-step input block target

    def live_bytes(nb_, cc_):
        in_blk = nb_ * cc_ * HW * in_itemsize      # double-buffered input
        out_blk = nb_ * HW * out_itemsize
        mask_blk = 4 * HW * 4
        scratch = 2 * nb_ * HW * 4                 # running sum / max
        interm = 24 * nb_ * HW * 4                 # f32 reduction + conv temps
        return 2 * in_blk + 2 * out_blk + 2 * mask_blk + scratch + interm

    # Channel chunk: multiple of the sublane pack so (cc, HW) blocks stay
    # (8,128)-legal; cc == C (full dim) is always legal.
    sub = 8 * max(1, 4 // max(1, in_itemsize))
    cc = C
    if C * HW * in_itemsize > in_cap:
        cands = [d for d in _divisors(C)
                 if d % sub == 0 and d * HW * in_itemsize <= in_cap]
        if cands:
            cc = max(cands)
        # TODO(synk): if no aligned C divisor fits, a single (C, HW) plane
        # exceeds the block target; spatial tiling would need a halo exchange.
    n_cchunks = C // cc

    # Batch block.  "Dense" candidates keep the 2-D (nb, HW) output block
    # (8,128)-legal: nb == N (full dim) or a multiple of 8.
    def fitting(cands):
        return [d for d in cands
                if d * cc * HW * in_itemsize <= in_cap
                and live_bytes(d, cc) <= vmem_budget]

    dense_cands = fitting([d for d in _divisors(N) if d == N or d % 8 == 0])
    if dense_cands:
        dense_out = True
        cands = dense_cands
    else:
        dense_out = False
        cands = fitting(_divisors(N)) or [1]
        if cands == [1] and N == 1:
            dense_out = True
    nb = max(cands)

    # Prefer >=2 grid steps when it is free (v7x: 2 TensorCores share the
    # "parallel" axis; a 1-step grid also has no DMA/compute pipelining).
    if (N // nb) * n_cchunks < 2:
        smaller = [d for d in cands if d < nb]
        if smaller:
            nb = max(smaller)

    vmem_limit = int(min(vmem_budget, max(16 * MiB, 2 * live_bytes(nb, cc))))
    return nb, cc, n_cchunks, dense_out, vmem_limit


# --------------------------------------------------------------------------- #
# Wrapper
# --------------------------------------------------------------------------- #
def sa_layer_forward(x, conv_weight):
    """x: (N, C, H, W); conv_weight: (1, 2, 3, 3).  Returns (N, 1, H, W)."""
    N, C, H, W = x.shape
    HW = H * W
    out_dtype = x.dtype

    # Lane-dense layout: flatten H*W into the last dim (free reshape on NCHW).
    x_flat = x.reshape(N, C, HW)

    # Conv weights -> SMEM; fold the channel-mean's 1/C into the avg branch.
    w = conv_weight.astype(jnp.float32)[0]                       # (2, 3, 3)
    w = w * jnp.array([1.0 / C, 1.0], jnp.float32)[:, None, None]
    w_flat = w.reshape(-1)                                       # (18,)

    # Host-precomputed zero-padding edge masks for the flattened layout.
    col = jnp.arange(HW, dtype=jnp.int32) % W
    row = jnp.arange(HW, dtype=jnp.int32) // W
    masks = jnp.stack([col > 0, col < W - 1, row > 0, row < H - 1])
    masks = masks.astype(jnp.float32)                            # (4, HW)

    nb, cc, n_cchunks, dense_out, vmem_limit = _choose_tiling(
        N, C, HW, x.dtype.itemsize, jnp.dtype(out_dtype).itemsize)
    grid = (N // nb, n_cchunks)

    if dense_out:
        out_shape = jax.ShapeDtypeStruct((N, HW), out_dtype)
        out_spec = pl.BlockSpec((nb, HW), lambda i, k: (i, 0))
    else:  # batch block not 8-aligned: keep a unit sublane dim (masked store)
        out_shape = jax.ShapeDtypeStruct((N, 1, HW), out_dtype)
        out_spec = pl.BlockSpec((nb, 1, HW), lambda i, k: (i, 0, 0))

    scratch_shapes = []
    if n_cchunks > 1:
        scratch_shapes = [pltpu.VMEM((nb, HW), jnp.float32),
                          pltpu.VMEM((nb, HW), jnp.float32)]

    out_flat = pl.pallas_call(
        functools.partial(_sa_kernel, W=W, n_cchunks=n_cchunks),
        out_shape=out_shape,
        grid=grid,
        in_specs=[
            pl.BlockSpec(memory_space=pltpu.MemorySpace.SMEM),    # weights
            pl.BlockSpec((4, HW), lambda i, k: (0, 0)),           # edge masks
            pl.BlockSpec((nb, cc, HW), lambda i, k: (i, k, 0)),   # x C-chunk
        ],
        out_specs=out_spec,
        scratch_shapes=scratch_shapes,
        compiler_params=pltpu.CompilerParams(
            dimension_semantics=("parallel", "arbitrary"),
            vmem_limit_bytes=vmem_limit),
    )(w_flat, masks, x_flat)

    return out_flat.reshape(N, 1, H, W)


# --------------------------------------------------------------------------- #
# Pure-JAX reference and test
# --------------------------------------------------------------------------- #
def _reference(x, conv_weight):
    """Pure-JAX reference mirroring the PyTorch forward (f32)."""
    avg_out = jnp.mean(x, axis=1, keepdims=True)
    max_out = jnp.max(x, axis=1, keepdims=True)
    xi = jnp.concatenate([avg_out, max_out], axis=1)             # (N,2,H,W)
    xi = jnp.pad(xi, ((0, 0), (0, 0), (1, 1), (1, 1)))
    N, _, Hp, Wp = xi.shape
    H, W = Hp - 2, Wp - 2
    out = jnp.zeros((N, 1, H, W), jnp.float32)
    for c in range(2):
        for kh in range(K):
            for kw in range(K):
                out = out + conv_weight[0, c, kh, kw] * \
                    xi[:, c:c + 1, kh:kh + H, kw:kw + W]
    return jax.nn.sigmoid(out)


if __name__ == "__main__":
    key = jax.random.PRNGKey(0)
    k_x, k_w = jax.random.split(key)

    N, C, H, W = 2, 4, 16, 16
    x = jax.random.normal(k_x, (N, C, H, W), dtype=jnp.float32)

    # deterministic conv weight init (kaiming-uniform-ish scale), shape (1,2,3,3)
    fan_in = 2 * K * K
    bound = (1.0 / fan_in) ** 0.5
    conv_weight = jax.random.uniform(
        k_w, (1, 2, K, K), minval=-bound, maxval=bound, dtype=jnp.float32)

    out = jax.block_until_ready(sa_layer_forward(x, conv_weight))
    ref = _reference(x, conv_weight)

    assert out.shape == (N, 1, H, W)
    assert jnp.allclose(out, ref, atol=1e-4, rtol=1e-4), (
        "Pallas output mismatch vs reference; max abs err = "
        f"{float(jnp.max(jnp.abs(out - ref)))}")

    print("KERNEL_OK")
</pallas_src>

<mosaic_0001>
module attributes {stable_mosaic.version = 11 : i64} {
  func.func @_sa_kernel(%arg0: i32, %arg1: i32, %arg2: memref<18xf32, #tpu.memory_space<smem>>, %arg3: memref<4x256xf32, #tpu.memory_space<vmem>>, %arg4: memref<2x4x256xf32, #tpu.memory_space<vmem>>, %arg5: memref<2x256xf32, #tpu.memory_space<vmem>>) attributes {dimension_semantics = [#tpu.dimension_semantics<parallel>, #tpu.dimension_semantics<arbitrary>], iteration_bounds = array<i64: 1, 1>, scalar_prefetch = 0 : i64, scratch_operands = 0 : i64, tpu.core_type = #tpu.core_type<tc>, window_params = [{transform_indices = @transform_0, window_bounds = array<i64: 18>}, {pipeline_mode = #tpu.pipeline_mode<synchronous>, transform_indices = @transform_1, window_bounds = array<i64: 4, 256>}, {transform_indices = @transform_2, window_bounds = array<i64: 2, 4, 256>}, {transform_indices = @transform_3, window_bounds = array<i64: 2, 256>}]} {
    %c0 = arith.constant 0 : index
    %c0_0 = arith.constant 0 : index
    %c0_1 = arith.constant 0 : index
    %0 = vector.load %arg4[%c0, %c0_0, %c0_1] : memref<2x4x256xf32, #tpu.memory_space<vmem>>, vector<2x4x256xf32>
    %cst = arith.constant dense<0.000000e+00> : vector<2x256xf32>
    %1 = vector.multi_reduction <add>, %0, %cst [1] : vector<2x4x256xf32> to vector<2x256xf32>
    %cst_2 = arith.constant dense<0xFF800000> : vector<2x256xf32>
    %2 = vector.multi_reduction <maximumf>, %0, %cst_2 [1] : vector<2x4x256xf32> to vector<2x256xf32>
    %c0_3 = arith.constant 0 : index
    %c0_4 = arith.constant 0 : index
    %3 = vector.load %arg3[%c0_3, %c0_4] : memref<4x256xf32, #tpu.memory_space<vmem>>, vector<1x256xf32>
    %c1 = arith.constant 1 : index
    %c0_5 = arith.constant 0 : index
    %4 = vector.load %arg3[%c1, %c0_5] : memref<4x256xf32, #tpu.memory_space<vmem>>, vector<1x256xf32>
    %c2 = arith.constant 2 : index
    %c0_6 = arith.constant 0 : index
    %5 = vector.load %arg3[%c2, %c0_6] : memref<4x256xf32, #tpu.memory_space<vmem>>, vector<1x256xf32>
    %c3 = arith.constant 3 : index
    %c0_7 = arith.constant 0 : index
    %6 = vector.load %arg3[%c3, %c0_7] : memref<4x256xf32, #tpu.memory_space<vmem>>, vector<1x256xf32>
    %c1_i32 = arith.constant 1 : i32
    %7 = tpu.dynamic_rotate %1 by %c1_i32 dim 1 : vector<2x256xf32>, i32 -> vector<2x256xf32>
    %8 = vector.broadcast %3 : vector<1x256xf32> to vector<2x256xf32>
    %9 = arith.mulf %7, %8 : vector<2x256xf32>
    %c255_i32 = arith.constant 255 : i32
    %10 = tpu.dynamic_rotate %1 by %c255_i32 dim 1 : vector<2x256xf32>, i32 -> vector<2x256xf32>
    %11 = vector.broadcast %4 : vector<1x256xf32> to vector<2x256xf32>
    %12 = arith.mulf %10, %11 : vector<2x256xf32>
    %c0_8 = arith.constant 0 : index
    %13 = memref.load %arg2[%c0_8] : memref<18xf32, #tpu.memory_space<smem>>
    %c1_9 = arith.constant 1 : index
    %14 = memref.load %arg2[%c1_9] : memref<18xf32, #tpu.memory_space<smem>>
    %c2_10 = arith.constant 2 : index
    %15 = memref.load %arg2[%c2_10] : memref<18xf32, #tpu.memory_space<smem>>
    %16 = vector.broadcast %13 : f32 to vector<2x256xf32>
    %17 = arith.mulf %16, %9 : vector<2x256xf32>
    %18 = vector.broadcast %14 : f32 to vector<2x256xf32>
    %19 = arith.mulf %18, %1 : vector<2x256xf32>
    %20 = arith.addf %17, %19 : vector<2x256xf32>
    %21 = vector.broadcast %15 : f32 to vector<2x256xf32>
    %22 = arith.mulf %21, %12 : vector<2x256xf32>
    %23 = arith.addf %20, %22 : vector<2x256xf32>
    %c3_11 = arith.constant 3 : index
    %24 = memref.load %arg2[%c3_11] : memref<18xf32, #tpu.memory_space<smem>>
    %c4 = arith.constant 4 : index
    %25 = memref.load %arg2[%c4] : memref<18xf32, #tpu.memory_space<smem>>
    %c5 = arith.constant 5 : index
    %26 = memref.load %arg2[%c5] : memref<18xf32, #tpu.memory_space<smem>>
    %27 = vector.broadcast %24 : f32 to vector<2x256xf32>
    %28 = arith.mulf %27, %9 : vector<2x256xf32>
    %29 = vector.broadcast %25 : f32 to vector<2x256xf32>
    %30 = arith.mulf %29, %1 : vector<2x256xf32>
    %31 = arith.addf %28, %30 : vector<2x256xf32>
    %32 = vector.broadcast %26 : f32 to vector<2x256xf32>
    %33 = arith.mulf %32, %12 : vector<2x256xf32>
    %34 = arith.addf %31, %33 : vector<2x256xf32>
    %c6 = arith.constant 6 : index
    %35 = memref.load %arg2[%c6] : memref<18xf32, #tpu.memory_space<smem>>
    %c7 = arith.constant 7 : index
    %36 = memref.load %arg2[%c7] : memref<18xf32, #tpu.memory_space<smem>>
    %c8 = arith.constant 8 : index
    %37 = memref.load %arg2[%c8] : memref<18xf32, #tpu.memory_space<smem>>
    %38 = vector.broadcast %35 : f32 to vector<2x256xf32>
    %39 = arith.mulf %38, %9 : vector<2x256xf32>
    %40 = vector.broadcast %36 : f32 to vector<2x256xf32>
    %41 = arith.mulf %40, %1 : vector<2x256xf32>
    %42 = arith.addf %39, %41 : vector<2x256xf32>
    %43 = vector.broadcast %37 : f32 to vector<2x256xf32>
    %44 = arith.mulf %43, %12 : vector<2x256xf32>
    %45 = arith.addf %42, %44 : vector<2x256xf32>
    %c1_i32_12 = arith.constant 1 : i32
    %46 = tpu.dynamic_rotate %2 by %c1_i32_12 dim 1 : vector<2x256xf32>, i32 -> vector<2x256xf32>
    %47 = vector.broadcast %3 : vector<1x256xf32> to vector<2x256xf32>
    %48 = arith.mulf %46, %47 : vector<2x256xf32>
    %c255_i32_13 = arith.constant 255 : i32
    %49 = tpu.dynamic_rotate %2 by %c255_i32_13 dim 1 : vector<2x256xf32>, i32 -> vector<2x256xf32>
    %50 = vector.broadcast %4 : vector<1x256xf32> to vector<2x256xf32>
    %51 = arith.mulf %49, %50 : vector<2x256xf32>
    %c9 = arith.constant 9 : index
    %52 = memref.load %arg2[%c9] : memref<18xf32, #tpu.memory_space<smem>>
    %c10 = arith.constant 10 : index
    %53 = memref.load %arg2[%c10] : memref<18xf32, #tpu.memory_space<smem>>
    %c11 = arith.constant 11 : index
    %54 = memref.load %arg2[%c11] : memref<18xf32, #tpu.memory_space<smem>>
    %55 = vector.broadcast %52 : f32 to vector<2x256xf32>
    %56 = arith.mulf %55, %48 : vector<2x256xf32>
    %57 = vector.broadcast %53 : f32 to vector<2x256xf32>
    %58 = arith.mulf %57, %2 : vector<2x256xf32>
    %59 = arith.addf %56, %58 : vector<2x256xf32>
    %60 = vector.broadcast %54 : f32 to vector<2x256xf32>
    %61 = arith.mulf %60, %51 : vector<2x256xf32>
    %62 = arith.addf %59, %61 : vector<2x256xf32>
    %63 = arith.addf %23, %62 : vector<2x256xf32>
    %c12 = arith.constant 12 : index
    %64 = memref.load %arg2[%c12] : memref<18xf32, #tpu.memory_space<smem>>
    %c13 = arith.constant 13 : index
    %65 = memref.load %arg2[%c13] : memref<18xf32, #tpu.memory_space<smem>>
    %c14 = arith.constant 14 : index
    %66 = memref.load %arg2[%c14] : memref<18xf32, #tpu.memory_space<smem>>
    %67 = vector.broadcast %64 : f32 to vector<2x256xf32>
    %68 = arith.mulf %67, %48 : vector<2x256xf32>
    %69 = vector.broadcast %65 : f32 to vector<2x256xf32>
    %70 = arith.mulf %69, %2 : vector<2x256xf32>
    %71 = arith.addf %68, %70 : vector<2x256xf32>
    %72 = vector.broadcast %66 : f32 to vector<2x256xf32>
    %73 = arith.mulf %72, %51 : vector<2x256xf32>
    %74 = arith.addf %71, %73 : vector<2x256xf32>
    %75 = arith.addf %34, %74 : vector<2x256xf32>
    %c15 = arith.constant 15 : index
    %76 = memref.load %arg2[%c15] : memref<18xf32, #tpu.memory_space<smem>>
    %c16 = arith.constant 16 : index
    %77 = memref.load %arg2[%c16] : memref<18xf32, #tpu.memory_space<smem>>
    %c17 = arith.constant 17 : index
    %78 = memref.load %arg2[%c17] : memref<18xf32, #tpu.memory_space<smem>>
    %79 = vector.broadcast %76 : f32 to vector<2x256xf32>
    %80 = arith.mulf %79, %48 : vector<2x256xf32>
    %81 = vector.broadcast %77 : f32 to vector<2x256xf32>
    %82 = arith.mulf %81, %2 : vector<2x256xf32>
    %83 = arith.addf %80, %82 : vector<2x256xf32>
    %84 = vector.broadcast %78 : f32 to vector<2x256xf32>
    %85 = arith.mulf %84, %51 : vector<2x256xf32>
    %86 = arith.addf %83, %85 : vector<2x256xf32>
    %87 = arith.addf %45, %86 : vector<2x256xf32>
    %c16_i32 = arith.constant 16 : i32
    %88 = tpu.dynamic_rotate %63 by %c16_i32 dim 1 : vector<2x256xf32>, i32 -> vector<2x256xf32>
    %89 = vector.broadcast %5 : vector<1x256xf32> to vector<2x256xf32>
    %90 = arith.mulf %88, %89 : vector<2x256xf32>
    %91 = arith.addf %75, %90 : vector<2x256xf32>
    %c240_i32 = arith.constant 240 : i32
    %92 = tpu.dynamic_rotate %87 by %c240_i32 dim 1 : vector<2x256xf32>, i32 -> vector<2x256xf32>
    %93 = vector.broadcast %6 : vector<1x256xf32> to vector<2x256xf32>
    %94 = arith.mulf %92, %93 : vector<2x256xf32>
    %95 = arith.addf %91, %94 : vector<2x256xf32>
    %cst_14 = arith.constant 0.000000e+00 : f32
    %96 = vector.broadcast %cst_14 : f32 to vector<2x256xf32>
    %97 = arith.subf %96, %95 : vector<2x256xf32>
    %98 = math.exp %97 : vector<2x256xf32>
    %cst_15 = arith.constant 1.000000e+00 : f32
    %99 = vector.broadcast %cst_15 : f32 to vector<2x256xf32>
    %100 = arith.addf %99, %98 : vector<2x256xf32>
    %cst_16 = arith.constant 1.000000e+00 : f32
    %101 = vector.broadcast %cst_16 : f32 to vector<2x256xf32>
    %102 = arith.divf %101, %100 : vector<2x256xf32>
    %c0_17 = arith.constant 0 : index
    %c0_18 = arith.constant 0 : index
    %103 = vector.load %arg5[%c0_17, %c0_18] : memref<2x256xf32, #tpu.memory_space<vmem>>, vector<2x256xf32>
    tpu.vector_store %arg5[%c0_17, %c0_18], %102 {strides = array<i32>} : memref<2x256xf32, #tpu.memory_space<vmem>>, vector<2x256xf32>,
    return
  }
  func.func @transform_0(%arg0: i32, %arg1: i32) -> i32 {
    %c0_i32 = arith.constant 0 : i32
    %c0_i32_0 = arith.constant 0 : i32
    return %c0_i32 : i32
  }
  func.func @transform_1(%arg0: i32, %arg1: i32) -> (i32, i32) {
    %c0_i32 = arith.constant 0 : i32
    %c0_i32_0 = arith.constant 0 : i32
    %c0_i32_1 = arith.constant 0 : i32
    return %c0_i32, %c0_i32_0 : i32, i32
  }
  func.func @transform_2(%arg0: i32, %arg1: i32) -> (i32, i32, i32) {
    %c0_i32 = arith.constant 0 : i32
    %c0_i32_0 = arith.constant 0 : i32
    return %arg0, %arg1, %c0_i32 : i32, i32, i32
  }
  func.func @transform_3(%arg0: i32, %arg1: i32) -> (i32, i32) {
    %c0_i32 = arith.constant 0 : i32
    %c0_i32_0 = arith.constant 0 : i32
    return %arg0, %c0_i32 : i32, i32
  }
}

</mosaic_0001>

<bundles_post_ra>
// kernel: tpu_custom_call.1
= control target key start
LH: loop header
LB: loop body
LE: loop exit
PB: predicated region body
PF: predicated region fallthrough
CT: control target
= control target key end

     0   :  { %8 = vsyncpa [#allocation5], 0  ;;  %s804_s0 = inlined_call_operand.hbm [shape: f32[18], index: 0, kind: input, shape index: {}]   ;;  %s805_s1 = inlined_call_operand.hbm [shape: f32[4,256], index: 1, kind: input, shape index: {}]   ;;  %s806_s2 = inlined_call_operand.hbm [shape: f32[2,4,256], index: 2, kind: input, shape index: {}]   ;;  %s807_s3 = inlined_call_operand.hbm [shape: f32[2,256], index: 3, kind: output, shape index: {}]  }
   0x1   :  { %9 = vsyncpa [#allocation3], 0 }
   0x2   :  { %10 = vsyncpa [#allocation8], 0 }
   0x3   :  { %11 = vsyncpa [#allocation4], 0  ;;  %s484_s14 = scalar_lea.hbm %s804_s0, 16 }
   0x4   :  { %p485_p0 = scmp.ne.s32.totalorder %s804_s0, %s484_s14  ;;  %p488_p1 = scmp.lt.u32.totalorder %s484_s14, %s804_s0 }
   0x6   :  { %p490_p2 = pnand %p488_p1, %p485_p0 }
   0x8   :  { %493 = shalt.err (!%p490_p2)
}
   0x9   :  { %s568_s19 = smov [#allocation2]   ;;  %s569_s22 = smov [#allocation6]  }
   0xa   :  { %19 = dma.hbm_to_smem %s804_s0, 16, %s568_s19, [#allocation5]  }
   0xb   :  { %s26_s23 = sshll.u32 %s569_s22, 4  ;;  %s570_s24 = smov [#allocation7]   ;;  %s27_s23 = int_to_ptr.vmem [resolvable:$true] %s26_s23 }
   0xc   :  { %s35_s25 = sshll.u32 %s570_s24, 4  ;;  %s494_s28 = scalar_lea.hbm %s805_s1, 128  ;;  %s36_s25 = int_to_ptr.vmem [resolvable:$true] %s35_s25 }
   0xd   :  { %p495_p3 = scmp.ne.s32.totalorder %s805_s1, %s494_s28  ;;  %p498_p4 = scmp.lt.u32.totalorder %s494_s28, %s805_s1 }
   0xf   :  { %p500_p5 = pnand %p498_p4, %p495_p3 }
  0x11   :  { %503 = shalt.err (!%p500_p5)
}
  0x12   :  { %s504_s0 = scalar_lea.vmem %s27_s23, 128  ;;  %p509_p7 = scmp.lt.s32.totalorder %s27_s23, %s27_s23 }
  0x13   :  { %p505_p6 = scmp.ne.s32.totalorder %s27_s23, %s504_s0  ;;  %p510_p8 = scmp.lt.s32.totalorder %s504_s0, %s504_s0 }
  0x15   :  { %p511_p9 = por %p510_p8, %p509_p7 }
  0x17   :  { %p512_p10 = pnand %p511_p9, %p505_p6 }
  0x19   :  { %515 = shalt.err (!%p512_p10)
}
  0x1a   :  { %29 = dma.hbm_to_vmem [thread:$0]  %s805_s1, 128, %s27_s23, [#allocation3]  }
  0x1b   :  { %s516_s10 = scalar_lea.hbm %s806_s2, 256 }
  0x1c   :  { %p517_p11 = scmp.ne.s32.totalorder %s806_s2, %s516_s10  ;;  %p520_p12 = scmp.lt.u32.totalorder %s516_s10, %s806_s2 }
  0x1e   :  { %p522_p13 = pnand %p520_p12, %p517_p11 }
  0x20   :  { %525 = shalt.err (!%p522_p13)
}
  0x21   :  { %s526_s15 = scalar_lea.vmem %s36_s25, 256  ;;  %p531_p1 = scmp.lt.s32.totalorder %s36_s25, %s36_s25 }
  0x22   :  { %p527_p0 = scmp.ne.s32.totalorder %s36_s25, %s526_s15  ;;  %p532_p2 = scmp.lt.s32.totalorder %s526_s15, %s526_s15 }
  0x24   :  { %p533_p3 = por %p532_p2, %p531_p1 }
  0x26   :  { %p534_p4 = pnand %p533_p3, %p527_p0 }
  0x28   :  { %537 = shalt.err (!%p534_p4)
}
  0x29   :  { %s571_s1 = smov 128   ;;  %s572_s16 = smov 8  }
  0x2a   :  { %41 = dma.hbm_to_vmem [thread:$0]  %s806_s2, 256, %s36_s25, [#allocation8], %s571_s1, %s571_s1, %s572_s16  }
  0x2b   :  { %560 = dma.done.wait [#allocation5], 16  }
  0x2c   :  { %561 = vsyncadd [#allocation5], 4294967280 }
  0x2d   :  { %562 = dma.done.wait [#allocation3], 128  }
  0x2e   :  { %563 = vsyncadd [#allocation3], 4294967168 }
  0x2f   :  { %564 = dma.done.wait [#allocation8], 256  }
  0x30   :  { %565 = vsyncadd [#allocation8], 4294967040 }
  0x31   :  { %51 = sfence }
  0x32   :  { %v52_v0 = vld [vmem:[#allocation7] sm:$0xff]  ;;  %v53_v1 = vld [vmem:[#allocation7 + $0x8] sm:$0xff]  ;;  %vm60_vm0 = vcmask 1043456   ;;  %vm128_vm1 = vcmask 1041409   ;;  %s458_s2 = sld [smem:[#allocation2 + $0xd]]  ;;  %s573_s19 = smov 1  }
  0x33   :  { %v89_v2 = vsel %vm60_vm0, %v52_v0, -inf  ;;  %v103_v3 = vsel %vm60_vm0, %v53_v1, -inf  ;;  %v61_v4 = vsel %vm60_vm0, %v52_v0, 0.0  ;;  %v75_v5 = vsel %vm60_vm0, %v53_v1, 0.0  ;;  %s449_s20 = sld [smem:[#allocation2 + $0x4]]  ;;  %s446_s21 = sld [smem:[#allocation2 + $0x1]] }
  0x34   :  { %v90_v6 = vrot.slane %v89_v2, 4  ;;  %v104_v7 = vrot.slane %v103_v3, 4  ;;  %v62_v8 = vrot.slane %v61_v4, 4  ;;  %v76_v9 = vrot.slane %v75_v5, 4  ;;  %s455_s22 = sld [smem:[#allocation2 + $0xa]]  ;;  %s574_s23 = smov 127  }
  0x35   :  { %v56_v10 = vcombine.high %v52_v0, %v52_v0  ;;  %v57_v11 = vcombine.high %v53_v1, %v53_v1  ;;  %s452_s24 = sld [smem:[#allocation2 + $0x7]]  ;;  %s461_s25 = sld [smem:[#allocation2 + $0x10]] }
  0x36   :  { %v91_v12 = vmax.f32 %v89_v2, %v90_v6  ;;  %v105_v13 = vmax.f32 %v103_v3, %v104_v7  ;;  %v63_v14 = vadd.f32 %v62_v8, %v61_v4  ;;  %v77_v15 = vadd.f32 %v76_v9, %v75_v5  ;;  %s710_s26 = sld [smem:[#allocation2 + $0x9]]  ;;  %s712_s27 = sld [smem:[#allocation2 + $0xc]] }
  0x37   :  { %v96_v16 = vsel %vm60_vm0, %v56_v10, -inf  ;;  %v110_v17 = vsel %vm60_vm0, %v57_v11, -inf  ;;  %v68_v18 = vsel %vm60_vm0, %v56_v10, 0.0  ;;  %v82_v19 = vsel %vm60_vm0, %v57_v11, 0.0  ;;  %s714_s28 = sld [smem:[#allocation2 + $0xf]]  ;;  %s716_s29 = sld [smem:[#allocation2 + $0x2]] }
  0x38   :  { %v92_v20 = vrot.slane %v91_v12, 2  ;;  %v106_v21 = vrot.slane %v105_v13, 2  ;;  %v64_v22 = vrot.slane %v63_v14, 2  ;;  %v78_v23 = vrot.slane %v77_v15, 2  ;;  %s718_s30 = sld [smem:[#allocation2 + $0x5]]  ;;  %s720_s4 = sld [smem:[#allocation2 + $0x8]] }
  0x39   :  { %v97_v24 = vrot.slane %v96_v16, 4  ;;  %v111_v25 = vrot.slane %v110_v17, 4  ;;  %v69_v26 = vrot.slane %v68_v18, 4  ;;  %v83_v27 = vrot.slane %v82_v19, 4  ;;  %s722_s5 = sld [smem:[#allocation2]]  ;;  %s724_s0 = sld [smem:[#allocation2 + $0x3]] }
  0x3a   :  { %v93_v28 = vmax.f32 %v91_v12, %v92_v20  ;;  %v107_v29 = vmax.f32 %v105_v13, %v106_v21  ;;  %v65_v30 = vadd.f32 %v64_v22, %v63_v14  ;;  %v79_v31 = vadd.f32 %v78_v23, %v77_v15  ;;  %s726_s6 = sld [smem:[#allocation2 + $0x6]]  ;;  %s734_s7 = sld [smem:[#allocation2 + $0xb]] }
  0x3b   :  { %v98_v32 = vmax.f32 %v96_v16, %v97_v24  ;;  %v112_v33 = vmax.f32 %v110_v17, %v111_v25  ;;  %v70_v34 = vadd.f32 %v69_v26, %v68_v18  ;;  %v84_v35 = vadd.f32 %v83_v27, %v82_v19  ;;  %s736_s8 = sld [smem:[#allocation2 + $0xe]]  ;;  %s738_s9 = sld [smem:[#allocation2 + $0x11]] }
  0x3c   :  { %v94_v36 = vrot.slane %v93_v28, 1  ;;  %v108_v37 = vrot.slane %v107_v29, 1  ;;  %v66_v38 = vrot.slane %v65_v30, 1  ;;  %v80_v39 = vrot.slane %v79_v31, 1  ;;  %s575_s10 = smov 16   ;;  %s576_s11 = smov 112  }
  0x3d   :  { %v99_v40 = vrot.slane %v98_v32, 2  ;;  %v113_v41 = vrot.slane %v112_v33, 2  ;;  %v71_v42 = vrot.slane %v70_v34, 2  ;;  %v85_v43 = vrot.slane %v84_v35, 2  ;;  %s577_s12 = smov [#allocation9]  }
  0x3e   :  { %v642_v44 = vmax.f32 %v93_v28, %v94_v36  ;;  %v644_v45 = vmax.f32 %v107_v29, %v108_v37  ;;  %v646_v46 = vadd.f32 %v66_v38, %v65_v30  ;;  %v648_v47 = vadd.f32 %v80_v39, %v79_v31  ;;  %s435_s13 = sshll.u32 %s577_s12, 4  ;;  %s436_s13 = int_to_ptr.vmem [resolvable:$true] %s435_s13 }
  0x3f   :  { %v100_v48 = vmax.f32 %v98_v32, %v99_v40  ;;  %v114_v49 = vmax.f32 %v112_v33, %v113_v41  ;;  %v72_v50 = vadd.f32 %v71_v42, %v70_v34  ;;  %v86_v51 = vadd.f32 %v85_v43, %v84_v35  ;;  %s538_s14 = scalar_lea.vmem %s436_s13, 64  ;;  %p543_p6 = scmp.lt.s32.totalorder %s436_s13, %s436_s13 }
  0x40   :  { %v257_v52 = vsel %vm128_vm1, %v644_v45, %v642_v44  ;;  %v129_v53 = vsel %vm128_vm1, %v648_v47, %v646_v46  ;;  %v311_v62 = vstv %s458_s2  ;;  %v207_v7 = vstv %s449_s20  ;;  %p539_p5 = scmp.ne.s32.totalorder %s436_s13, %s538_s14  ;;  %p544_p7 = scmp.lt.s32.totalorder %s538_s14, %s538_s14 }
  0x41   :  { %261 = vrot.lane.b32.xlu1 %v257_v52, %s573_s19  ;;  %133 = vrot.lane.b32.xlu0 %v129_v53, %s573_s19  ;;  %v101_v54 = vrot.slane %v100_v48, 1  ;;  %v115_v55 = vrot.slane %v114_v49, 1  ;;  %v73_v56 = vrot.slane %v72_v50, 1  ;;  %v87_v57 = vrot.slane %v86_v51, 1 }
  0x42   :  { %v312_v0 = vmul.f32 %v311_v62, %v642_v44  ;;  %v314_v3 = vmul.f32 %v311_v62, %v644_v45  ;;  %v208_v8 = vmul.f32 %v207_v7, %v646_v46  ;;  %v210_v10 = vmul.f32 %v207_v7, %v648_v47  ;;  %p545_p8 = por %p544_p7, %p543_p6 }
  0x43   :  { %v102_v58 = vmax.f32 %v100_v48, %v101_v54  ;;  %v116_v59 = vmax.f32 %v114_v49, %v115_v55  ;;  %v74_v60 = vadd.f32 %v73_v56, %v72_v50  ;;  %v88_v61 = vadd.f32 %v87_v57, %v86_v51  ;;  %v119_v50 = vld [vmem:[#allocation6 + $0x1] ss:$4 sm:$0x3] }
  0x44   :  { %v662_v5 = vsel %vm128_vm1, %v314_v3, %v312_v0  ;;  %v181_v12 = vstv %s446_s21  ;;  %v283_v13 = vstv %s455_s22  ;;  %v671_v14 = vsel %vm128_vm1, %v210_v10, %v208_v8  ;;  %p546_p9 = pnand %p545_p8, %p539_p5 }
  0x45   :  { %155 = vrot.lane.b32.xlu0 %v129_v53, %s574_s23  ;;  %v258_v63 = vsel %vm128_vm1, %v116_v59, %v102_v58  ;;  %v313_v1 = vmul.f32 %v311_v62, %v102_v58  ;;  %v130_v2 = vsel %vm128_vm1, %v88_v61, %v74_v60  ;;  %v315_v4 = vmul.f32 %v311_v62, %v116_v59 }
  0x46   :  { %263 = vrot.lane.b32.xlu1 %v258_v63, %s573_s19  ;;  %v209_v9 = vmul.f32 %v207_v7, %v74_v60  ;;  %v211_v11 = vmul.f32 %v207_v7, %v88_v61  ;;  %v183_v16 = vmul.f32 %v181_v12, %v74_v60  ;;  %v185_v17 = vmul.f32 %v181_v12, %v88_v61 }
  0x47   :  { %v665_v6 = vsel %vm128_vm1, %v315_v4, %v313_v1  ;;  %v285_v18 = vmul.f32 %v283_v13, %v102_v58  ;;  %v287_v19 = vmul.f32 %v283_v13, %v116_v59  ;;  %v182_v20 = vmul.f32 %v181_v12, %v646_v46 }
  0x48   :  { %v674_v15 = vsel %vm128_vm1, %v211_v11, %v209_v9  ;;  %v184_v21 = vmul.f32 %v181_v12, %v648_v47  ;;  %v681_v22 = vsel %vm128_vm1, %v185_v17, %v183_v16  ;;  %v284_v23 = vmul.f32 %v283_v13, %v642_v44 }
  0x49   :  { %135 = vrot.lane.b32.xlu0 %v130_v2, %s573_s19  ;;  %v286_v24 = vmul.f32 %v283_v13, %v644_v45  ;;  %v233_v25 = vstv %s452_s24  ;;  %v686_v26 = vsel %vm128_vm1, %v287_v19, %v285_v18  ;;  %v339_v31 = vstv %s461_s25 }
  0x4a   :  { %157 = vrot.lane.b32.xlu1 %v130_v2, %s574_s23  ;;  %v689_v27 = vsel %vm128_vm1, %v184_v21, %v182_v20  ;;  %v235_v28 = vmul.f32 %v233_v25, %v74_v60  ;;  %v237_v29 = vmul.f32 %v233_v25, %v88_v61  ;;  %v234_v32 = vmul.f32 %v233_v25, %v646_v46 }
  0x4b   :  { %v692_v30 = vsel %vm128_vm1, %v286_v24, %v284_v23  ;;  %v236_v33 = vmul.f32 %v233_v25, %v648_v47  ;;  %v341_v35 = vmul.f32 %v339_v31, %v102_v58  ;;  %v343_v36 = vmul.f32 %v339_v31, %v116_v59 }
  0x4c   :  { %v697_v34 = vsel %vm128_vm1, %v237_v29, %v235_v28  ;;  %v340_v37 = vmul.f32 %v339_v31, %v642_v44  ;;  %v342_v39 = vmul.f32 %v339_v31, %v644_v45  ;;  %v137_v42 = vlaneseq  ;;  %v117_v44 = vld [vmem:[#allocation6] ss:$4 sm:$0x3] }
  0x4d   :  { %269 = vrot.lane.b32.xlu0 %v257_v52, %s574_s23  ;;  %v701_v38 = vsel %vm128_vm1, %v236_v33, %v234_v32  ;;  %v705_v40 = vsel %vm128_vm1, %v343_v36, %v341_v35  ;;  %v280_v54 = vstv %s710_s26  ;;  %v308_v55 = vstv %s712_s27 }
  0x4e   :  { %271 = vrot.lane.b32.xlu1 %v258_v63, %s574_s23  ;;  %v708_v41 = vsel %vm128_vm1, %v342_v39, %v340_v37  ;;  %v144_v43 = vshrl.u32 %v137_v42, 7  ;;  %v728_v45 = vand.u32 127, %v137_v42  ;;  %v336_v56 = vstv %s714_s28 }
  0x4f   :  { %v196_v60 = vstv %s716_s29  ;;  %v222_v63 = vstv %s718_s30  ;;  %v248_v0 = vstv %s720_s4  ;;  %v178_v3 = vstv %s722_s5 }
  0x50   :  { %v730_v46 = vsub.s32 0, %v144_v43  ;;  %v732_v47 = vsub.s32 1, %v144_v43  ;;  %vm139_vm2 = vcmp.lt.s32.totalorder %v728_v45, 1  ;;  %vm159_vm3 = vcmp.lt.s32.totalorder %v728_v45, 127 }
  0x51   :  { %v204_v4 = vstv %s724_s0  ;;  %v230_v7 = vstv %s726_s6  ;;  %v298_v9 = vstv %s734_s7  ;;  %v326_v10 = vstv %s736_s8 }
  0x52   :  { %v146_v51 = vrot.slane %v117_v44, %v730_v46  ;;  %v150_v52 = vrot.slane %v117_v44, %v732_v47  ;;  %v166_v58 = vrot.slane %v119_v50, %v730_v46  ;;  %v170_v59 = vrot.slane %v119_v50, %v732_v47 }
  0x53   :  { %v354_v11 = vstv %s738_s9  ;;  %vm365_vm4 = vcmp.lt.s32.totalorder %v728_v45, 16  ;;  %vm387_vm5 = vcmp.lt.s32.totalorder %v728_v45, 112 }
  0xb3   :  { %v262_v48 = vpop.permute.xlu1 %261  ;;  %v134_v49 = vpop.permute.xlu0 %133 }
  0xb7   :  { %v156_v53 = vpop.permute.xlu0 %155 }
  0xb8   :  { %v264_v57 = vpop.permute.xlu1 %263 }
  0xb9   :  { %v265_v61 = vsel %vm139_vm2, %v262_v48, %v264_v57  ;;  %v266_v62 = vsel %vm139_vm2, %v264_v57, %v262_v48 }
  0xba   :  { %v267_v1 = vmul.f32 %v266_v62, %v146_v51  ;;  %v268_v2 = vmul.f32 %v265_v61, %v150_v52 }
  0xbb   :  { %v136_v8 = vpop.permute.xlu0 %135 }
  0xbc   :  { %v281_v12 = vmul.f32 %v280_v54, %v267_v1  ;;  %v282_v13 = vmul.f32 %v280_v54, %v268_v2  ;;  %v309_v16 = vmul.f32 %v308_v55, %v267_v1  ;;  %v310_v17 = vmul.f32 %v308_v55, %v268_v2  ;;  %v158_v18 = vpop.permute.xlu1 %157 }
  0xbd   :  { %v337_v19 = vmul.f32 %v336_v56, %v267_v1  ;;  %v338_v20 = vmul.f32 %v336_v56, %v268_v2  ;;  %v160_v21 = vsel %vm159_vm3, %v156_v53, %v158_v18  ;;  %v161_v23 = vsel %vm159_vm3, %v158_v18, %v156_v53 }
  0xbe   :  { %v324_v24 = vadd.f32 %v662_v5, %v309_v16  ;;  %v325_v25 = vadd.f32 %v665_v6, %v310_v17  ;;  %v173_v28 = vmul.f32 %v166_v58, %v160_v21  ;;  %v174_v29 = vmul.f32 %v170_v59, %v161_v23 }
  0xbf   :  { %v140_v31 = vsel %vm139_vm2, %v134_v49, %v136_v8  ;;  %v141_v32 = vsel %vm139_vm2, %v136_v8, %v134_v49  ;;  %v270_v33 = vpop.permute.xlu0 %269  ;;  %v297_v35 = vadd.f32 %v686_v26, %v282_v13  ;;  %v296_v36 = vadd.f32 %v692_v30, %v281_v12 }
  0xc0   :  { %v197_v37 = vmul.f32 %v196_v60, %v173_v28  ;;  %v198_v39 = vmul.f32 %v196_v60, %v174_v29  ;;  %v223_v42 = vmul.f32 %v222_v63, %v173_v28  ;;  %v224_v43 = vmul.f32 %v222_v63, %v174_v29  ;;  %v272_v5 = vpop.permute.xlu1 %271 }
  0xc1   :  { %v249_v44 = vmul.f32 %v248_v0, %v173_v28  ;;  %v250_v6 = vmul.f32 %v248_v0, %v174_v29  ;;  %v153_v48 = vmul.f32 %v146_v51, %v141_v32  ;;  %v154_v50 = vmul.f32 %v150_v52, %v140_v31  ;;  %v123_v31 = vld [vmem:[#allocation6 + $0x3] ss:$4 sm:$0x3] }
  0xc2   :  { %v273_v53 = vsel %vm159_vm3, %v270_v33, %v272_v5  ;;  %v274_v49 = vsel %vm159_vm3, %v272_v5, %v270_v33  ;;  %v353_v54 = vadd.f32 %v705_v40, %v338_v20  ;;  %v352_v26 = vadd.f32 %v708_v41, %v337_v19 }
  0xc3   :  { %v179_v30 = vmul.f32 %v178_v3, %v153_v48  ;;  %v180_v55 = vmul.f32 %v178_v3, %v154_v50  ;;  %v205_v56 = vmul.f32 %v204_v4, %v153_v48  ;;  %v206_v57 = vmul.f32 %v204_v4, %v154_v50 }
  0xc4   :  { %v231_v60 = vmul.f32 %v230_v7, %v153_v48  ;;  %v232_v61 = vmul.f32 %v230_v7, %v154_v50  ;;  %v275_v62 = vmul.f32 %v273_v53, %v166_v58  ;;  %v276_v63 = vmul.f32 %v274_v49, %v170_v59 }
  0xc5   :  { %v220_v51 = vadd.f32 %v671_v14, %v205_v56  ;;  %v221_v52 = vadd.f32 %v674_v15, %v206_v57  ;;  %v195_v0 = vadd.f32 %v681_v22, %v180_v55  ;;  %v194_v1 = vadd.f32 %v689_v27, %v179_v30 }
  0xc6   :  { %v299_v2 = vmul.f32 %v298_v9, %v275_v62  ;;  %v300_v40 = vmul.f32 %v298_v9, %v276_v63  ;;  %v327_v8 = vmul.f32 %v326_v10, %v275_v62  ;;  %v328_v41 = vmul.f32 %v326_v10, %v276_v63 }
  0xc7   :  { %v355_v12 = vmul.f32 %v354_v11, %v275_v62  ;;  %v356_v3 = vmul.f32 %v354_v11, %v276_v63  ;;  %v200_v13 = vadd.f32 %v198_v39, %v195_v0  ;;  %v199_v4 = vadd.f32 %v197_v37, %v194_v1 }
  0xc8   :  { %v302_v16 = vadd.f32 %v300_v40, %v297_v35  ;;  %v301_v7 = vadd.f32 %v299_v2, %v296_v36  ;;  %v247_v58 = vadd.f32 %v697_v34, %v232_v61  ;;  %v246_v14 = vadd.f32 %v701_v38, %v231_v60  ;;  %v121_v34 = vld [vmem:[#allocation6 + $0x2] ss:$4 sm:$0x3] }
  0xc9   :  { %v358_v59 = vadd.f32 %v356_v3, %v353_v54  ;;  %v357_v15 = vadd.f32 %v355_v12, %v352_v26  ;;  %v225_v17 = vadd.f32 %v223_v42, %v220_v51  ;;  %v226_v22 = vadd.f32 %v224_v43, %v221_v52 }
  0xca   :  { %v304_v18 = vadd.f32 %v302_v16, %v200_v13  ;;  %v303_v27 = vadd.f32 %v301_v7, %v199_v4  ;;  %v252_v19 = vadd.f32 %v250_v6, %v247_v58  ;;  %v251_v9 = vadd.f32 %v249_v44, %v246_v14 }
  0xcb   :  { %v329_v20 = vadd.f32 %v327_v8, %v324_v24  ;;  %v330_v10 = vadd.f32 %v328_v41, %v325_v25  ;;  %v372_v38 = vrot.slane %v121_v34, %v730_v46  ;;  %v376_v29 = vrot.slane %v121_v34, %v732_v47 }
  0xcc   :  { %363 = vrot.lane.b32.xlu1 %v304_v18, %s575_s10  ;;  %361 = vrot.lane.b32.xlu0 %v303_v27, %s575_s10  ;;  %v360_v11 = vadd.f32 %v358_v59, %v252_v19  ;;  %v359_v21 = vadd.f32 %v357_v15, %v251_v9  ;;  %v394_v37 = vrot.slane %v123_v31, %v730_v46 }
  0xcd   :  { %v331_v23 = vadd.f32 %v329_v20, %v225_v17  ;;  %v332_v28 = vadd.f32 %v330_v10, %v226_v22  ;;  %v398_v39 = vrot.slane %v123_v31, %v732_v47 }
  0xd0   :  { %385 = vrot.lane.b32.xlu1 %v360_v11, %s576_s11  ;;  %383 = vrot.lane.b32.xlu0 %v359_v21, %s576_s11 }
 0x13e   :  { %v364_v24 = vpop.permute.xlu1 %363  ;;  %v362_v25 = vpop.permute.xlu0 %361 }
 0x13f   :  { %v366_v32 = vsel %vm365_vm4, %v362_v25, %v364_v24  ;;  %v367_v33 = vsel %vm365_vm4, %v364_v24, %v362_v25 }
 0x140   :  { %v379_v35 = vmul.f32 %v372_v38, %v367_v33  ;;  %v380_v36 = vmul.f32 %v376_v29, %v366_v32 }
 0x142   :  { %v386_v42 = vpop.permute.xlu1 %385  ;;  %v384_v43 = vpop.permute.xlu0 %383  ;;  %v381_v6 = vadd.f32 %v379_v35, %v331_v23  ;;  %v382_v48 = vadd.f32 %v380_v36, %v332_v28 }
 0x143   :  { %v388_v5 = vsel %vm387_vm5, %v384_v43, %v386_v42  ;;  %v389_v44 = vsel %vm387_vm5, %v386_v42, %v384_v43 }
 0x144   :  { %v401_v50 = vmul.f32 %v394_v37, %v388_v5  ;;  %v402_v53 = vmul.f32 %v398_v39, %v389_v44 }
 0x146   :  { %v403_v49 = vadd.f32 %v401_v50, %v381_v6  ;;  %v404_v54 = vadd.f32 %v402_v53, %v382_v48 }
 0x148   :  { %v405_v26 = vsub.f32 0.0, %v403_v49  ;;  %v406_v30 = vsub.f32 0.0, %v404_v54 }
 0x14a   :  { %v407_v55 = vmul.f32 1.442695, %v405_v26  ;;  %v409_v45 = vmul.f32 1.442695, %v406_v30 }
 0x14c   :  { %476 = vpow2.f32 %v407_v55 }
 0x14d   :  { %478 = vpow2.f32 %v409_v45 }
 0x156   :  { %v477_v56 = vpop.eup %476 }
 0x157   :  { %v479_v46 = vpop.eup %478  ;;  %v411_v57 = vadd.f32 1.0, %v477_v56 }
 0x158   :  { %v412_v47 = vadd.f32 1.0, %v479_v46 }
 0x159   :  { %480 = vrcp.f32 %v411_v57 }
 0x15a   :  { %482 = vrcp.f32 %v412_v47 }
 0x163   :  { %v481_v60 = vpop.eup %480 }
 0x164   :  { %v483_v61 = vpop.eup %482 }
 0x165   :  { %v419_v62 = vcombine.low %v481_v60, %v483_v61 }
 0x167   :  { %463 = vst.sshfl [vmem:[#allocation9] sm:$0x33 pattern:$0x76325410] %v419_v62 }
 0x168   :  { %549 = shalt.err (!%p546_p9)
}
 0x169   :  { %s550_s16 = scalar_lea.hbm %s807_s3, 64 }
 0x16a   :  { %p551_p10 = scmp.ne.s32.totalorder %s807_s3, %s550_s16  ;;  %p554_p11 = scmp.lt.u32.totalorder %s550_s16, %s807_s3 }
 0x16c   :  { %p556_p12 = pnand %p554_p11, %p551_p10 }
 0x16e   :  { %559 = shalt.err (!%p556_p12)
}
 0x16f   :  { %438 = dma.vmem_to_hbm [thread:$0]  %s436_s13, 64, %s807_s3, [#allocation4]  }
 0x170   :  { %566 = dma.done.wait [#allocation4], 64  }
 0x171   :  { %567 = vsyncadd [#allocation4], 4294967232 }
 0x172   :  { %442 = vsyncpa [#allocation3], 1 }
 0x173   :  { %443 = vsyncpa [#allocation8], 1 }
 0x174   :  { %444 = vsyncpa [#allocation4], 1 }
 0x175   :  { %445 = vsyncpa [#allocation5], 1 }

</bundles_post_ra>
